<compile_context>
chip_gen: v6e
topology: v6e:2x2x1
jax: 0.10.0
libtpu: 0.0.40
codegen_flags: <defaults>
</compile_context>

<pallas_src>
import functools

import jax
import jax.numpy as jnp
from jax.experimental import pallas as pl
from jax.experimental.pallas import tpu as pltpu


def _round_up(x, m):
    return (x + m - 1) // m * m


def _actor_kernel(x_ref,
                  w1_ref, b1_ref,
                  w2_ref, b2_ref,
                  wh_ref, bh_ref,
                  out_ref, *, out_size):
    # linear1 + relu  (bf16 operands, f32 accumulation on the MXU)
    h1 = jnp.dot(x_ref[...], w1_ref[...], preferred_element_type=jnp.float32)
    h1 = jnp.maximum(h1 + b1_ref[...], 0.0).astype(jnp.bfloat16)

    # linear2 + relu
    h2 = jnp.dot(h1, w2_ref[...], preferred_element_type=jnp.float32)
    h2 = jnp.maximum(h2 + b2_ref[...], 0.0).astype(jnp.bfloat16)

    # fused mu/sigma head: one matmul into a narrow (TB, HEAD_W) tile.
    head = jnp.dot(h2, wh_ref[...], preferred_element_type=jnp.float32) + bh_ref[...]

    # lanes [0, out_size)           -> tanh      (mu)
    # lanes [out_size, 2*out_size)  -> softplus  (sigma)
    # lanes [2*out_size, HEAD_W)    -> zero-weight padding, sliced off later.
    lane = jax.lax.broadcasted_iota(jnp.int32, head.shape, 1)
    mu = jnp.tanh(head)
    sigma = jnp.maximum(head, 0.0) + jnp.log1p(jnp.exp(-jnp.abs(head)))  # stable softplus
    out_ref[...] = jnp.where(lane < out_size, mu, sigma).astype(out_ref.dtype)


def init_params(key, input_size, output_size):
    """f32 reference parameters, weights stored transposed as (in, out)."""
    def linear(k, fan_in, fan_out):
        kw, kb = jax.random.split(k)
        bound = 1.0 / jnp.sqrt(fan_in)
        w = jax.random.uniform(kw, (fan_in, fan_out), jnp.float32, -bound, bound)
        b = jax.random.uniform(kb, (fan_out,), jnp.float32, -bound, bound)
        return w, b.reshape(1, fan_out)

    k1, k2, k3, k4 = jax.random.split(key, 4)
    w1, b1 = linear(k1, input_size, 32)
    w2, b2 = linear(k2, 32, 16)
    w_mu, b_mu = linear(k3, 16, output_size)
    w_sig, b_sig = linear(k4, 16, output_size)
    return {"w1": w1, "b1": b1, "w2": w2, "b2": b2,
            "w_mu": w_mu, "b_mu": b_mu, "w_sigma": w_sig, "b_sigma": b_sig}


def prepare_kernel_params(p, output_size):
    """One-time host-side prep: fuse mu/sigma heads, pad to a narrow multiple-of-8
    width, cast matmul weights to bf16 (biases stay f32 for the f32 accumulators)."""
    assert output_size >= 1, "output_size must be positive"
    head_width = _round_up(2 * output_size, 8)
    head_w = jnp.concatenate([p["w_mu"], p["w_sigma"]], axis=1)   # (16, 2*out)
    head_b = jnp.concatenate([p["b_mu"], p["b_sigma"]], axis=1)   # (1, 2*out)
    pad = head_width - 2 * output_size
    head_w = jnp.pad(head_w, ((0, 0), (0, pad)))                  # (16, HEAD_W)
    head_b = jnp.pad(head_b, ((0, 0), (0, pad)))                  # (1, HEAD_W)
    return {
        "w1": p["w1"].astype(jnp.bfloat16), "b1": p["b1"],
        "w2": p["w2"].astype(jnp.bfloat16), "b2": p["b2"],
        "w_head": head_w.astype(jnp.bfloat16), "b_head": head_b,
    }


def actor_forward(x, kparams, *, out_size, block_b=None):
    """x: (B, input_size) f32. kparams: output of prepare_kernel_params."""
    B, in_size = x.shape
    head_width = kparams["w_head"].shape[1]

    # Batch tile: multiple of 8 sublanes.  Cap is large (per-step overhead
    # dominates otherwise); when B >= 16 force at least 2 grid steps so v7x
    # can shard the "parallel" batch axis across its two TensorCores.
    if block_b is None:
        cap = 8192
        n_guess = max(1, pl.cdiv(B, cap))
        if B >= 16:
            n_guess = max(2, n_guess)
        block_b = _round_up(pl.cdiv(B, n_guess), 8)
    block_b = max(8, _round_up(block_b, 8))
    b_pad = _round_up(B, block_b)
    n_tiles = b_pad // block_b

    xb = x.astype(jnp.bfloat16)
    if b_pad != B:
        xb = jnp.pad(xb, ((0, b_pad - B), (0, 0)))

    w1, b1 = kparams["w1"], kparams["b1"]
    w2, b2 = kparams["w2"], kparams["b2"]
    wh, bh = kparams["w_head"], kparams["b_head"]

    const = lambda shape: pl.BlockSpec(shape, lambda i: (0, 0))

    out = pl.pallas_call(
        functools.partial(_actor_kernel, out_size=out_size),
        grid=(n_tiles,),
        in_specs=[
            pl.BlockSpec((block_b, in_size), lambda i: (i, 0)),
            const(w1.shape), const(b1.shape),
            const(w2.shape), const(b2.shape),
            const(wh.shape), const(bh.shape),
        ],
        out_specs=pl.BlockSpec((block_b, head_width), lambda i: (i, 0)),
        out_shape=jax.ShapeDtypeStruct((b_pad, head_width), jnp.float32),
        compiler_params=pltpu.CompilerParams(
            dimension_semantics=("parallel",)),
    )(xb, w1, b1, w2, b2, wh, bh)

    mu = out[:B, :out_size]
    sigma = out[:B, out_size:2 * out_size]
    return mu, sigma


def actor_forward_ref(x, p):
    """Pure-JAX f32 reference for correctness checking."""
    h1 = jnp.maximum(x @ p["w1"] + p["b1"], 0.0)
    h2 = jnp.maximum(h1 @ p["w2"] + p["b2"], 0.0)
    mu = jnp.tanh(h2 @ p["w_mu"] + p["b_mu"])
    sigma = jax.nn.softplus(h2 @ p["w_sigma"] + p["b_sigma"])
    return mu, sigma


def _check(batch, input_size, output_size, k_params, k_x):
    params_f32 = init_params(k_params, input_size, output_size)
    kparams = prepare_kernel_params(params_f32, output_size)
    x = jax.random.normal(k_x, (batch, input_size), jnp.float32)

    mu, sigma = actor_forward(x, kparams, out_size=output_size)
    jax.block_until_ready((mu, sigma))

    mu_ref, sigma_ref = actor_forward_ref(x, params_f32)
    assert mu.shape == (batch, output_size) and sigma.shape == (batch, output_size)
    # bf16 matmul operands vs f32 reference -> loose-ish tolerance.
    assert jnp.allclose(mu, mu_ref, atol=5e-2), "mu mismatch"
    assert jnp.allclose(sigma, sigma_ref, atol=5e-2), "sigma mismatch"
    assert bool(jnp.all(sigma > 0.0)), "softplus output must be positive"


if __name__ == "__main__":
    key = jax.random.PRNGKey(0)
    k_params, k_x1, k_x2 = jax.random.split(key, 3)

    input_size, output_size = 4, 2
    _check(8, input_size, output_size, k_params, k_x1)    # single-tile path
    _check(48, input_size, output_size, k_params, k_x2)   # 2-tile "parallel" path

    print("KERNEL_OK")
</pallas_src>

<mosaic_0001>
module attributes {stable_mosaic.version = 11 : i64} {
  func.func @_actor_kernel(%arg0: i32, %arg1: memref<8x4xbf16, #tpu.memory_space<vmem>>, %arg2: memref<4x32xbf16, #tpu.memory_space<vmem>>, %arg3: memref<1x32xf32, #tpu.memory_space<vmem>>, %arg4: memref<32x16xbf16, #tpu.memory_space<vmem>>, %arg5: memref<1x16xf32, #tpu.memory_space<vmem>>, %arg6: memref<16x8xbf16, #tpu.memory_space<vmem>>, %arg7: memref<1x8xf32, #tpu.memory_space<vmem>>, %arg8: memref<8x8xf32, #tpu.memory_space<vmem>>) attributes {dimension_semantics = [#tpu.dimension_semantics<parallel>], iteration_bounds = array<i64: 1>, scalar_prefetch = 0 : i64, scratch_operands = 0 : i64, tpu.core_type = #tpu.core_type<tc>, window_params = [{transform_indices = @transform_0, window_bounds = array<i64: 8, 4>}, {pipeline_mode = #tpu.pipeline_mode<synchronous>, transform_indices = @transform_1, window_bounds = array<i64: 4, 32>}, {pipeline_mode = #tpu.pipeline_mode<synchronous>, transform_indices = @transform_2, window_bounds = array<i64: 1, 32>}, {pipeline_mode = #tpu.pipeline_mode<synchronous>, transform_indices = @transform_3, window_bounds = array<i64: 32, 16>}, {pipeline_mode = #tpu.pipeline_mode<synchronous>, transform_indices = @transform_4, window_bounds = array<i64: 1, 16>}, {pipeline_mode = #tpu.pipeline_mode<synchronous>, transform_indices = @transform_5, window_bounds = array<i64: 16, 8>}, {pipeline_mode = #tpu.pipeline_mode<synchronous>, transform_indices = @transform_6, window_bounds = array<i64: 1, 8>}, {transform_indices = @transform_7, window_bounds = array<i64: 8, 8>}]} {
    %c0 = arith.constant 0 : index
    %c0_0 = arith.constant 0 : index
    %0 = vector.load %arg1[%c0, %c0_0] : memref<8x4xbf16, #tpu.memory_space<vmem>>, vector<8x4xbf16>
    %c0_1 = arith.constant 0 : index
    %c0_2 = arith.constant 0 : index
    %1 = vector.load %arg2[%c0_1, %c0_2] : memref<4x32xbf16, #tpu.memory_space<vmem>>, vector<4x32xbf16>
    %cst = arith.constant dense<0.000000e+00> : vector<8x32xf32>
    %2 = tpu.matmul %0, %1, %cst {dimension_numbers = #tpu.dot_dimension_numbers<[1], [0], [0], [1], [0, 0, 1, 1], [], []>} : vector<8x4xbf16>, vector<4x32xbf16>, vector<8x32xf32> -> vector<8x32xf32>
    %c0_3 = arith.constant 0 : index
    %c0_4 = arith.constant 0 : index
    %3 = vector.load %arg3[%c0_3, %c0_4] : memref<1x32xf32, #tpu.memory_space<vmem>>, vector<1x32xf32>
    %4 = vector.broadcast %3 : vector<1x32xf32> to vector<8x32xf32>
    %5 = arith.addf %2, %4 : vector<8x32xf32>
    %cst_5 = arith.constant 0.000000e+00 : f32
    %6 = vector.broadcast %cst_5 : f32 to vector<8x32xf32>
    %7 = arith.maximumf %5, %6 : vector<8x32xf32>
    %8 = arith.truncf %7 : vector<8x32xf32> to vector<8x32xbf16>
    %c0_6 = arith.constant 0 : index
    %c0_7 = arith.constant 0 : index
    %9 = vector.load %arg4[%c0_6, %c0_7] : memref<32x16xbf16, #tpu.memory_space<vmem>>, vector<32x16xbf16>
    %cst_8 = arith.constant dense<0.000000e+00> : vector<8x16xf32>
    %10 = tpu.matmul %8, %9, %cst_8 {dimension_numbers = #tpu.dot_dimension_numbers<[1], [0], [0], [1], [0, 0, 1, 1], [], []>} : vector<8x32xbf16>, vector<32x16xbf16>, vector<8x16xf32> -> vector<8x16xf32>
    %c0_9 = arith.constant 0 : index
    %c0_10 = arith.constant 0 : index
    %11 = vector.load %arg5[%c0_9, %c0_10] : memref<1x16xf32, #tpu.memory_space<vmem>>, vector<1x16xf32>
    %12 = vector.broadcast %11 : vector<1x16xf32> to vector<8x16xf32>
    %13 = arith.addf %10, %12 : vector<8x16xf32>
    %cst_11 = arith.constant 0.000000e+00 : f32
    %14 = vector.broadcast %cst_11 : f32 to vector<8x16xf32>
    %15 = arith.maximumf %13, %14 : vector<8x16xf32>
    %16 = arith.truncf %15 : vector<8x16xf32> to vector<8x16xbf16>
    %c0_12 = arith.constant 0 : index
    %c0_13 = arith.constant 0 : index
    %17 = vector.load %arg6[%c0_12, %c0_13] : memref<16x8xbf16, #tpu.memory_space<vmem>>, vector<16x8xbf16>
    %cst_14 = arith.constant dense<0.000000e+00> : vector<8x8xf32>
    %18 = tpu.matmul %16, %17, %cst_14 {dimension_numbers = #tpu.dot_dimension_numbers<[1], [0], [0], [1], [0, 0, 1, 1], [], []>} : vector<8x16xbf16>, vector<16x8xbf16>, vector<8x8xf32> -> vector<8x8xf32>
    %c0_15 = arith.constant 0 : index
    %c0_16 = arith.constant 0 : index
    %19 = vector.load %arg7[%c0_15, %c0_16] : memref<1x8xf32, #tpu.memory_space<vmem>>, vector<1x8xf32>
    %20 = vector.broadcast %19 : vector<1x8xf32> to vector<8x8xf32>
    %21 = arith.addf %18, %20 : vector<8x8xf32>
    %22 = tpu.iota {dimensions = array<i32: 1>} : vector<8x8xi32>
    %23 = math.tanh %21 : vector<8x8xf32>
    %cst_17 = arith.constant 0.000000e+00 : f32
    %24 = vector.broadcast %cst_17 : f32 to vector<8x8xf32>
    %25 = arith.maximumf %21, %24 : vector<8x8xf32>
    %26 = math.absf %21 : vector<8x8xf32>
    %cst_18 = arith.constant 0.000000e+00 : f32
    %27 = vector.broadcast %cst_18 : f32 to vector<8x8xf32>
    %28 = arith.subf %27, %26 : vector<8x8xf32>
    %29 = math.exp %28 : vector<8x8xf32>
    %30 = math.log1p %29 : vector<8x8xf32>
    %31 = arith.addf %25, %30 : vector<8x8xf32>
    %c2_i32 = arith.constant 2 : i32
    %32 = vector.broadcast %c2_i32 : i32 to vector<8x8xi32>
    %33 = arith.cmpi slt, %22, %32 : vector<8x8xi32>
    %34 = arith.select %33, %23, %31 : vector<8x8xi1>, vector<8x8xf32>
    %c0_19 = arith.constant 0 : index
    %c0_20 = arith.constant 0 : index
    %35 = vector.load %arg8[%c0_19, %c0_20] : memref<8x8xf32, #tpu.memory_space<vmem>>, vector<8x8xf32>
    tpu.vector_store %arg8[%c0_19, %c0_20], %34 {strides = array<i32>} : memref<8x8xf32, #tpu.memory_space<vmem>>, vector<8x8xf32>,
    return
  }
  func.func @transform_0(%arg0: i32) -> (i32, i32) {
    %c0_i32 = arith.constant 0 : i32
    %c0_i32_0 = arith.constant 0 : i32
    return %arg0, %c0_i32 : i32, i32
  }
  func.func @transform_1(%arg0: i32) -> (i32, i32) {
    %c0_i32 = arith.constant 0 : i32
    %c0_i32_0 = arith.constant 0 : i32
    %c0_i32_1 = arith.constant 0 : i32
    return %c0_i32, %c0_i32_0 : i32, i32
  }
  func.func @transform_2(%arg0: i32) -> (i32, i32) {
    %c0_i32 = arith.constant 0 : i32
    %c0_i32_0 = arith.constant 0 : i32
    %c0_i32_1 = arith.constant 0 : i32
    return %c0_i32, %c0_i32_0 : i32, i32
  }
  func.func @transform_3(%arg0: i32) -> (i32, i32) {
    %c0_i32 = arith.constant 0 : i32
    %c0_i32_0 = arith.constant 0 : i32
    %c0_i32_1 = arith.constant 0 : i32
    return %c0_i32, %c0_i32_0 : i32, i32
  }
  func.func @transform_4(%arg0: i32) -> (i32, i32) {
    %c0_i32 = arith.constant 0 : i32
    %c0_i32_0 = arith.constant 0 : i32
    %c0_i32_1 = arith.constant 0 : i32
    return %c0_i32, %c0_i32_0 : i32, i32
  }
  func.func @transform_5(%arg0: i32) -> (i32, i32) {
    %c0_i32 = arith.constant 0 : i32
    %c0_i32_0 = arith.constant 0 : i32
    %c0_i32_1 = arith.constant 0 : i32
    return %c0_i32, %c0_i32_0 : i32, i32
  }
  func.func @transform_6(%arg0: i32) -> (i32, i32) {
    %c0_i32 = arith.constant 0 : i32
    %c0_i32_0 = arith.constant 0 : i32
    %c0_i32_1 = arith.constant 0 : i32
    return %c0_i32, %c0_i32_0 : i32, i32
  }
  func.func @transform_7(%arg0: i32) -> (i32, i32) {
    %c0_i32 = arith.constant 0 : i32
    %c0_i32_0 = arith.constant 0 : i32
    return %arg0, %c0_i32 : i32, i32
  }
}

</mosaic_0001>

<bundles_post_ra>
// kernel: tpu_custom_call.1
= control target key start
LH: loop header
LB: loop body
LE: loop exit
PB: predicated region body
PF: predicated region fallthrough
CT: control target
= control target key end

     0   :  { %vm41_vm0 = vcmask 1041408   ;;  %v321_v1 = vmov 0.0   ;;  %vm322_vm1 = vmmov 0   ;;  %vm37_vm2 = vcmask 31744   ;;  %s391_s0 = inlined_call_operand.vmem [shape: bf16[8,4], index: 0, kind: input, shape index: {}]   ;;  %s392_s1 = inlined_call_operand.vmem [shape: bf16[4,32], index: 1, kind: input, shape index: {}]   ;;  %s393_s2 = inlined_call_operand.vmem [shape: f32[1,32], index: 2, kind: input, shape index: {}]   ;;  %s394_s3 = inlined_call_operand.vmem [shape: bf16[32,16], index: 3, kind: input, shape index: {}]   ;;  %s395_s4 = inlined_call_operand.vmem [shape: f32[1,16], index: 4, kind: input, shape index: {}]   ;;  %s396_s5 = inlined_call_operand.vmem [shape: bf16[16,8], index: 5, kind: input, shape index: {}]   ;;  %s397_s6 = inlined_call_operand.vmem [shape: f32[1,8], index: 6, kind: input, shape index: {}]   ;;  %s398_s7 = inlined_call_operand.hbm [shape: f32[8,8], index: 7, kind: output, shape index: {}]  }
   0x1   :  { %v29_v0 = vld [vmem:[%s392_s1] sm:$0x3]  ;;  %267 = vmatprep.subr.bf16.mxu0 %v321_v1  ;;  %269 = vmatprep.mubr.msk.bf16.mxu0 %vm322_vm1, %v321_v1 }
   0x2   :  { %v43_v2 = vsel %vm41_vm0, %v29_v0, 0  ;;  %v28_v3 = vld [vmem:[%s391_s0] sm:$0xf]  ;;  %273 = vmatprep.subr.bf16.mxu1 %v321_v1  ;;  %277 = vmatprep.mubr.msk.bf16.mxu1 %vm322_vm1, %v321_v1 }
   0x3   :  { %268 = vmatpush3.bf16.msra.mxu0 %v43_v2 }
   0x4   :  { %281 = vmatprep.subr.bf16.mxu0 %v321_v1 }
   0x5   :  { %12 = vsyncpa [#allocation3], 0  ;;  %v290_v4 = vld [vmem:[%s394_s3 + $0x8] sm:$0xff]   ;;  %v291_v5 = vld [vmem:[%s394_s3] sm:$0xff]   ;;  %vm110_vm3 = vcmask 261120   ;;  %vm171_vm4 = vcmask 130048   ;;  %v215_v35 = vlaneseq }
   0x6   :  { %270 = vmatmul.mubr.msk.bf16.vlgmr.msra.gmra.mxu0 %vm37_vm2, %v28_v3  ;;  %274 = vmatpush3.bf16.msra.mxu1 %v290_v4  ;;  %v292_v6 = vld [vmem:[%s396_s5] sm:$0xff]   ;;  %vm235_vm7 = vcmask 64512  }
   0x7   :  { %283 = vmatprep.mubr.msk.bf16.mxu0 %vm322_vm1, %v321_v1  ;;  %275 = vmatprep.subr.bf16.mxu1 %v321_v1  ;;  %v251_v7 = vld [vmem:[%s393_s2] ss:$0 sm:$0xff]  ;;  %v216_v38 = vand.u32 127, %v215_v35 }
   0x8   :  { %282 = vmatpush3.bf16.msra.mxu0 %v292_v6  ;;  %v253_v15 = vld [vmem:[%s395_s4] ss:$0 sm:$0xff]  ;;  %s323_s4 = smov [#allocation2]  }
   0x9   :  { %v257_v23 = vld [vmem:[%s397_s6] ss:$0 sm:$0xff]  ;;  %s243_s6 = sshll.u32 %s323_s4, 4  ;;  %vm233_vm6 = vcmp.lt.s32.totalorder %v216_v38, 2  ;;  %s244_s6 = int_to_ptr.vmem [resolvable:$true] %s243_s6 }
   0xa   :  { %276 = vmatpush3.bf16.msra.mxu1 %v291_v5  ;;  %s299_s12 = scalar_lea.vmem %s244_s6, 128  ;;  %p304_p1 = scmp.lt.s32.totalorder %s244_s6, %s244_s6 }
   0xb   :  { %p300_p0 = scmp.ne.s32.totalorder %s244_s6, %s299_s12  ;;  %p305_p2 = scmp.lt.s32.totalorder %s299_s12, %s299_s12 }
   0xd   :  { %p306_p3 = por %p305_p2, %p304_p1 }
   0xf   :  { %p307_p4 = pnand %p306_p3, %p300_p0 }
  0xc6   :  { %v79_v8 = vpop.f32.mrf.mxu0 }
  0xc7   :  { %v80_v9 = vadd.f32 %v251_v7, %v79_v8 }
  0xc8   :  { %v271_v10 = vpop.f32.mrf.mxu0 }
  0xc9   :  { %v85_v11 = vmax.f32 %v80_v9, 0.0 }
  0xca   :  { %v82_v12 = vpop.f32.mrf.mxu0 }
  0xcb   :  { %v86_v13 = vpack.c.bf16 %v85_v11, %v85_v11 }
  0xcc   :  { %v272_v14 = vpop.f32.mrf.mxu0 }
  0xcd   :  { %278 = vmatmul.mubr.msk.bf16.vlgmr.msra.gmra.mxu1 %vm110_vm3, %v86_v13 }
 0x18d   :  { %v148_v16 = vpop.f32.mrf.mxu1 }
 0x18e   :  { %v149_v17 = vadd.f32 %v253_v15, %v148_v16 }
 0x18f   :  { %v279_v18 = vpop.f32.mrf.mxu1 }
 0x190   :  { %v154_v19 = vmax.f32 %v149_v17, 0.0 }
 0x191   :  { %v151_v20 = vpop.f32.mrf.mxu1 }
 0x192   :  { %v155_v21 = vpack.c.bf16 %v154_v19, %v154_v19 }
 0x193   :  { %v280_v22 = vpop.f32.mrf.mxu1 }
 0x194   :  { %284 = vmatmul.mubr.msk.bf16.vlgmr.msra.gmra.mxu0 %vm171_vm4, %v155_v21 }
 0x254   :  { %v209_v24 = vpop.f32.mrf.mxu0 }
 0x255   :  { %v210_v25 = vadd.f32 %v257_v23, %v209_v24 }
 0x256   :  { %v285_v26 = vpop.f32.mrf.mxu0 }
 0x257   :  { %v219_v27 = vand.u32 2147483647, %v210_v25  ;;  %v218_v42 = vmax.f32 %v210_v25, 0.0 }
 0x258   :  { %v212_v28 = vpop.f32.mrf.mxu0 }
 0x259   :  { %v220_v29 = vsub.f32 0.0, %v219_v27 }
 0x25a   :  { %v286_v30 = vpop.f32.mrf.mxu0 }
 0x25b   :  { %v221_v31 = vmul.f32 1.442695, %v220_v29 }
 0x25d   :  { %293 = vpow2.f32 %v221_v31 }
 0x26a   :  { %v294_v32 = vpop.eup %293 }
 0x26b   :  { %v223_v33 = vadd.f32 1.0, %v294_v32  ;;  %v226_v34 = vmul.f32 -0.5, %v294_v32  ;;  %v229_v37 = vand.u32 2147483647, %v294_v32 }
 0x26d   :  { %295 = vlog2.f32 %v223_v33  ;;  %v227_v36 = vadd.f32 1.0, %v226_v34  ;;  %vm230_vm5 = vcmp.lt.f32.partialorder %v229_v37, 0.0004427343 }
 0x26e   :  { %297 = vtanh.f32 %v210_v25 }
 0x26f   :  { %v228_v41 = vmul.f32 %v294_v32, %v227_v36 }
 0x27a   :  { %v296_v39 = vpop.eup %295 }
 0x27b   :  { %v225_v40 = vmul.f32 0.6931472, %v296_v39  ;;  %v298_v45 = vpop.eup %297 }
 0x27d   :  { %v231_v43 = vsel %vm230_vm5, %v228_v41, %v225_v40 }
 0x27e   :  { %v232_v44 = vadd.f32 %v231_v43, %v218_v42 }
 0x280   :  { %v234_v46 = vsel %vm233_vm6, %v298_v45, %v232_v44 }
 0x281   :  { %236 = vst.msk [vmem:[#allocation2] sm:$0xff] %vm235_vm7, %v234_v46 }
 0x282   :  { %310 = shalt.err (!%p307_p4)
}
 0x283   :  { %246 = dma.vmem_to_hbm [thread:$0]  %s244_s6, 128, %s398_s7, [#allocation3]  }
 0x284   :  { %319 = dma.done.wait [#allocation3], 128  }
 0x285   :  { %320 = vsyncadd [#allocation3], 4294967168 }
 0x286   :  { %250 = vsyncpa [#allocation3], 1 }

</bundles_post_ra>
